<compile_context>
chip_gen: v6e
topology: v6e:2x2x1
jax: 0.10.0
libtpu: 0.0.40
codegen_flags: <defaults>
</compile_context>

<pallas_src>
import math

import jax
import jax.numpy as jnp
from jax import lax
from jax.experimental import pallas as pl
from jax.experimental.pallas import tpu as pltpu

_INV_SQRT2 = 0.7071067811865476


def _round_up(x, m):
    return (x + m - 1) // m * m


def _hw_config():
    """Per-generation decoder vocab tile + scoped VMEM limit."""
    try:
        info = pltpu.get_tpu_info()
        vmem_bytes = int(getattr(info, "vmem_capacity_bytes", 64 << 20))
    except Exception:
        vmem_bytes = 64 << 20                  # conservative (v7x-sized) fallback
    if vmem_bytes >= (96 << 20):               # v5e / v6e: 128 MiB physical VMEM
        return 8192, 96 << 20
    return 4096, 40 << 20                      # v7x: 64 MiB per TensorCore


# --------------------------------------------------------------------------
# Kernel 1: BertPredictionHeadTransform
#   h = LayerNorm(gelu(x @ Wd.T + bd)) * gamma + beta      (bf16 out)
# --------------------------------------------------------------------------
def _transform_kernel(x_ref, wd_ref, bd_ref, gamma_ref, beta_ref, h_ref):
    # dense: x @ Wd.T  -> contract last dim of both operands (no transpose)
    h = lax.dot_general(
        x_ref[...], wd_ref[...],
        dimension_numbers=(((1,), (1,)), ((), ())),
        preferred_element_type=jnp.float32)
    h = h + bd_ref[...]
    # erf-form gelu; multiply by 1/sqrt(2) instead of dividing
    h = h * 0.5 * (1.0 + lax.erf(h * jnp.float32(_INV_SQRT2)))
    # BertLayerNorm, eps = 1e-12; one-pass mean/var (single XLU reduction pass
    # per statistic over the same h), rsqrt on EUP.
    u = jnp.mean(h, axis=-1, keepdims=True)
    m2 = jnp.mean(h * h, axis=-1, keepdims=True)
    var = jnp.maximum(m2 - u * u, 0.0)
    h = (h - u) * lax.rsqrt(var + 1e-12)
    h_ref[...] = (gamma_ref[...] * h + beta_ref[...]).astype(h_ref.dtype)


# --------------------------------------------------------------------------
# Kernel 2: tied-embedding decoder
#   logits = h @ E.T + dec_bias
# grid = (vocab tiles, token tiles) -- token axis innermost, so each emb tile
# is fetched from HBM exactly once per vocab index.
# --------------------------------------------------------------------------
def _decoder_kernel(h_ref, emb_ref, dbias_ref, out_ref):
    acc = lax.dot_general(
        h_ref[...], emb_ref[...],
        dimension_numbers=(((1,), (1,)), ((), ())),
        preferred_element_type=jnp.float32)
    out_ref[...] = (acc + dbias_ref[...]).astype(out_ref.dtype)


# --------------------------------------------------------------------------
# Kernel 3: seq_relationship = pooled @ Wsr.T + bsr   (hidden -> 2)
# Weights pre-padded (once) to 128 output lanes so the store is lane-dense.
# --------------------------------------------------------------------------
def _nsp_kernel(p_ref, w_ref, b_ref, out_ref):
    out_ref[...] = lax.dot_general(
        p_ref[...], w_ref[...],
        dimension_numbers=(((1,), (1,)), ((), ())),
        preferred_element_type=jnp.float32) + b_ref[...]


# --------------------------------------------------------------------------
# One-time parameter preparation (hoisted out of the forward path).
# --------------------------------------------------------------------------
def prepare_heads_params(params, nsp_pad=128):
    H = params["dense_w"].shape[0]
    V = params["emb"].shape[0]
    sr_w = jnp.zeros((nsp_pad, H), jnp.float32).at[:2].set(
        params["sr_w"].astype(jnp.float32))
    sr_b = jnp.zeros((1, nsp_pad), jnp.float32).at[0, :2].set(
        params["sr_b"].astype(jnp.float32))
    return {
        "dense_w": params["dense_w"].astype(jnp.bfloat16),     # (H, H)
        "dense_b": params["dense_b"].reshape(1, H).astype(jnp.float32),
        "ln_gamma": params["ln_gamma"].reshape(1, H).astype(jnp.float32),
        "ln_beta": params["ln_beta"].reshape(1, H).astype(jnp.float32),
        "emb": params["emb"].astype(jnp.bfloat16),              # (V, H)
        "dec_bias": params["dec_bias"].reshape(1, V).astype(jnp.float32),
        "sr_w": sr_w,                                           # (128, H)
        "sr_b": sr_b,                                           # (1, 128)
    }


# --------------------------------------------------------------------------
# LM prediction head: transform + tied-embedding decoder.
# --------------------------------------------------------------------------
def lm_prediction_head(tokens, prep, *, tt_transform=1024, tt_decoder=256,
                       tv=None, vmem_limit=None, logits_dtype=jnp.bfloat16):
    T, H = tokens.shape
    V = prep["emb"].shape[0]

    tv_auto, vmem_auto = _hw_config()
    if tv is None:
        tv = tv_auto
    if vmem_limit is None:
        vmem_limit = vmem_auto

    # Clamp tiles to problem size; keep sublane/lane alignment. Non-dividing
    # tiles are handled by ragged boundary blocks (no padding, no slicing).
    tt_t = min(tt_transform, _round_up(T, 16))
    tt_d = min(tt_decoder, _round_up(T, 16))
    tv = min(tv, _round_up(V, 128))

    x = tokens.astype(jnp.bfloat16)

    # ---- transform kernel: (T, H) bf16 ----
    h = pl.pallas_call(
        _transform_kernel,
        out_shape=jax.ShapeDtypeStruct((T, H), jnp.bfloat16),
        grid_spec=pltpu.PrefetchScalarGridSpec(
            num_scalar_prefetch=0,
            grid=(pl.cdiv(T, tt_t),),
            in_specs=[
                pl.BlockSpec((tt_t, H), lambda i: (i, 0)),   # x tokens
                pl.BlockSpec((H, H), lambda i: (0, 0)),      # dense weight (grid-invariant)
                pl.BlockSpec((1, H), lambda i: (0, 0)),      # dense bias
                pl.BlockSpec((1, H), lambda i: (0, 0)),      # LN gamma
                pl.BlockSpec((1, H), lambda i: (0, 0)),      # LN beta
            ],
            out_specs=pl.BlockSpec((tt_t, H), lambda i: (i, 0)),
        ),
        compiler_params=pltpu.CompilerParams(
            dimension_semantics=("parallel",),
            vmem_limit_bytes=vmem_limit),
    )(x, prep["dense_w"], prep["dense_b"], prep["ln_gamma"], prep["ln_beta"])

    # ---- decoder kernel: (T, V) logits, written exactly once ----
    logits = pl.pallas_call(
        _decoder_kernel,
        out_shape=jax.ShapeDtypeStruct((T, V), logits_dtype),
        grid_spec=pltpu.PrefetchScalarGridSpec(
            num_scalar_prefetch=0,
            grid=(pl.cdiv(V, tv), pl.cdiv(T, tt_d)),         # vocab outer, tokens inner
            in_specs=[
                pl.BlockSpec((tt_d, H), lambda j, i: (i, 0)),   # h tokens
                pl.BlockSpec((tv, H), lambda j, i: (j, 0)),     # embedding tile (once per j)
                pl.BlockSpec((1, tv), lambda j, i: (0, j)),     # decoder bias tile
            ],
            out_specs=pl.BlockSpec((tt_d, tv), lambda j, i: (i, j)),
        ),
        compiler_params=pltpu.CompilerParams(
            # vocab axis "parallel" so the v7x megacore split keeps the
            # "embedding fetched once" invariant; token axis stays sequential.
            dimension_semantics=("parallel", "arbitrary"),
            vmem_limit_bytes=vmem_limit),
    )(h, prep["emb"], prep["dec_bias"])

    return logits


# --------------------------------------------------------------------------
# seq_relationship head (NSP).
# --------------------------------------------------------------------------
def seq_relationship(pooled, sr_w_pad, sr_b_pad):
    B, H = pooled.shape
    NPAD = sr_w_pad.shape[0]
    out = pl.pallas_call(
        _nsp_kernel,
        out_shape=jax.ShapeDtypeStruct((B, NPAD), jnp.float32),
        in_specs=[
            pl.BlockSpec((B, H), lambda: (0, 0)),
            pl.BlockSpec((NPAD, H), lambda: (0, 0)),
            pl.BlockSpec((1, NPAD), lambda: (0, 0)),
        ],
        out_specs=pl.BlockSpec((B, NPAD), lambda: (0, 0)),
        grid=(),
    )(pooled.astype(jnp.float32), sr_w_pad, sr_b_pad)
    return out[:, :2]


# --------------------------------------------------------------------------
# Module wrapper (BertPreTrainingHeads.forward)
# --------------------------------------------------------------------------
def bert_pretraining_heads(sequence_output, pooled_output, prep, *,
                           tt_transform=1024, tt_decoder=256, tv=None,
                           vmem_limit=None, logits_dtype=jnp.bfloat16):
    B, S, H = sequence_output.shape
    tokens = sequence_output.reshape(B * S, H)
    scores = lm_prediction_head(
        tokens, prep,
        tt_transform=tt_transform, tt_decoder=tt_decoder, tv=tv,
        vmem_limit=vmem_limit, logits_dtype=logits_dtype)
    prediction_scores = scores.reshape(B, S, -1)
    seq_rel_scores = seq_relationship(pooled_output, prep["sr_w"], prep["sr_b"])
    return prediction_scores, seq_rel_scores


# --------------------------------------------------------------------------
# Pure-JAX f32 reference (for verification)
# --------------------------------------------------------------------------
def _reference(sequence_output, pooled_output, p):
    x = sequence_output
    h = x @ p["dense_w"].T + p["dense_b"]
    h = h * 0.5 * (1.0 + lax.erf(h / jnp.float32(math.sqrt(2.0))))
    u = jnp.mean(h, axis=-1, keepdims=True)
    s = jnp.mean((h - u) ** 2, axis=-1, keepdims=True)
    h = (h - u) / jnp.sqrt(s + 1e-12)
    h = p["ln_gamma"] * h + p["ln_beta"]
    pred = h @ p["emb"].T + p["dec_bias"]
    nsp = pooled_output @ p["sr_w"].T + p["sr_b"]
    return pred, nsp


def _make_params(key, H, V):
    ks = jax.random.split(key, 8)
    init = 0.02
    return {
        "dense_w": init * jax.random.normal(ks[0], (H, H), jnp.float32),
        "dense_b": init * jax.random.normal(ks[1], (H,), jnp.float32),
        "ln_gamma": jnp.ones((H,), jnp.float32),
        "ln_beta": jnp.zeros((H,), jnp.float32),
        "emb": init * jax.random.normal(ks[2], (V, H), jnp.float32),
        "dec_bias": init * jax.random.normal(ks[3], (V,), jnp.float32),
        "sr_w": init * jax.random.normal(ks[4], (2, H), jnp.float32),
        "sr_b": init * jax.random.normal(ks[5], (2,), jnp.float32),
    }


def _run_case(key, B, S, H, V, **kw):
    kp, kx, kpool = jax.random.split(key, 3)
    params = _make_params(kp, H, V)
    prep = prepare_heads_params(params)          # one-time weight prep (hoisted)
    sequence_output = jax.random.normal(kx, (B, S, H), jnp.float32)
    pooled_output = jax.random.normal(kpool, (B, H), jnp.float32)

    pred, nsp = bert_pretraining_heads(sequence_output, pooled_output, prep, **kw)
    pred = jax.block_until_ready(pred)
    nsp = jax.block_until_ready(nsp)

    pred_ref, nsp_ref = _reference(sequence_output, pooled_output, params)
    assert pred.shape == (B, S, V) and nsp.shape == (B, 2)
    # bf16 MXU operands + bf16 h + bf16 logits -> tolerance consistent with bf16.
    assert jnp.allclose(pred.astype(jnp.float32), pred_ref, atol=3e-2, rtol=3e-2)
    assert jnp.allclose(nsp, nsp_ref, atol=1e-4, rtol=1e-4)


if __name__ == "__main__":
    key = jax.random.PRNGKey(0)
    k1, k2 = jax.random.split(key)

    # Case 1: tiny, single-tile (hidden=128, vocab=256, batch=2, seq=8).
    _run_case(k1, B=2, S=8, H=128, V=256)

    # Case 2: multi-tile + ragged boundary blocks on both token and vocab
    # axes (forced small tiles so the grid / masked-edge paths are exercised).
    _run_case(k2, B=2, S=40, H=128, V=392,
              tt_transform=32, tt_decoder=16, tv=128)

    print("KERNEL_OK")
</pallas_src>

<mosaic_0001>
module attributes {stable_mosaic.version = 11 : i64} {
  func.func @_transform_kernel(%arg0: i32, %arg1: memref<16x128xbf16, #tpu.memory_space<vmem>>, %arg2: memref<128x128xbf16, #tpu.memory_space<vmem>>, %arg3: memref<1x128xf32, #tpu.memory_space<vmem>>, %arg4: memref<1x128xf32, #tpu.memory_space<vmem>>, %arg5: memref<1x128xf32, #tpu.memory_space<vmem>>, %arg6: memref<16x128xbf16, #tpu.memory_space<vmem>>) attributes {dimension_semantics = [#tpu.dimension_semantics<parallel>], iteration_bounds = array<i64: 1>, scalar_prefetch = 0 : i64, scratch_operands = 0 : i64, tpu.core_type = #tpu.core_type<tc>, window_params = [{transform_indices = @transform_0, window_bounds = array<i64: 16, 128>}, {pipeline_mode = #tpu.pipeline_mode<synchronous>, transform_indices = @transform_1, window_bounds = array<i64: 128, 128>}, {pipeline_mode = #tpu.pipeline_mode<synchronous>, transform_indices = @transform_2, window_bounds = array<i64: 1, 128>}, {pipeline_mode = #tpu.pipeline_mode<synchronous>, transform_indices = @transform_3, window_bounds = array<i64: 1, 128>}, {pipeline_mode = #tpu.pipeline_mode<synchronous>, transform_indices = @transform_4, window_bounds = array<i64: 1, 128>}, {transform_indices = @transform_5, window_bounds = array<i64: 16, 128>}]} {
    %c0 = arith.constant 0 : index
    %c0_0 = arith.constant 0 : index
    %0 = vector.load %arg1[%c0, %c0_0] : memref<16x128xbf16, #tpu.memory_space<vmem>>, vector<16x128xbf16>
    %c0_1 = arith.constant 0 : index
    %c0_2 = arith.constant 0 : index
    %1 = vector.load %arg2[%c0_1, %c0_2] : memref<128x128xbf16, #tpu.memory_space<vmem>>, vector<128x128xbf16>
    %cst = arith.constant dense<0.000000e+00> : vector<16x128xf32>
    %2 = tpu.matmul %0, %1, %cst {dimension_numbers = #tpu.dot_dimension_numbers<[1], [1], [0], [0], [0, 0, 1, 0], [], []>} : vector<16x128xbf16>, vector<128x128xbf16>, vector<16x128xf32> -> vector<16x128xf32>
    %c0_3 = arith.constant 0 : index
    %c0_4 = arith.constant 0 : index
    %3 = vector.load %arg3[%c0_3, %c0_4] : memref<1x128xf32, #tpu.memory_space<vmem>>, vector<1x128xf32>
    %4 = vector.broadcast %3 : vector<1x128xf32> to vector<16x128xf32>
    %5 = arith.addf %2, %4 : vector<16x128xf32>
    %cst_5 = arith.constant 5.000000e-01 : f32
    %6 = vector.broadcast %cst_5 : f32 to vector<16x128xf32>
    %7 = arith.mulf %5, %6 : vector<16x128xf32>
    %cst_6 = arith.constant 0.707106769 : f32
    %8 = vector.broadcast %cst_6 : f32 to vector<16x128xf32>
    %9 = arith.mulf %5, %8 : vector<16x128xf32>
    %10 = math.erf %9 : vector<16x128xf32>
    %cst_7 = arith.constant 1.000000e+00 : f32
    %11 = vector.broadcast %cst_7 : f32 to vector<16x128xf32>
    %12 = arith.addf %11, %10 : vector<16x128xf32>
    %13 = arith.mulf %7, %12 : vector<16x128xf32>
    %cst_8 = arith.constant dense<0.000000e+00> : vector<16xf32>
    %14 = vector.multi_reduction <add>, %13, %cst_8 [1] : vector<16x128xf32> to vector<16xf32>
    %15 = vector.shape_cast %14 : vector<16xf32> to vector<16x1xf32>
    %cst_9 = arith.constant 1.280000e+02 : f32
    %16 = vector.broadcast %cst_9 : f32 to vector<16x1xf32>
    %17 = arith.divf %15, %16 : vector<16x1xf32>
    %18 = arith.mulf %13, %13 : vector<16x128xf32>
    %cst_10 = arith.constant dense<0.000000e+00> : vector<16xf32>
    %19 = vector.multi_reduction <add>, %18, %cst_10 [1] : vector<16x128xf32> to vector<16xf32>
    %20 = vector.shape_cast %19 : vector<16xf32> to vector<16x1xf32>
    %cst_11 = arith.constant 1.280000e+02 : f32
    %21 = vector.broadcast %cst_11 : f32 to vector<16x1xf32>
    %22 = arith.divf %20, %21 : vector<16x1xf32>
    %23 = arith.mulf %17, %17 : vector<16x1xf32>
    %24 = arith.subf %22, %23 : vector<16x1xf32>
    %cst_12 = arith.constant 0.000000e+00 : f32
    %25 = vector.broadcast %cst_12 : f32 to vector<16x1xf32>
    %26 = arith.maximumf %24, %25 : vector<16x1xf32>
    %27 = vector.broadcast %17 : vector<16x1xf32> to vector<16x128xf32>
    %28 = arith.subf %13, %27 : vector<16x128xf32>
    %cst_13 = arith.constant 9.99999996E-13 : f32
    %29 = vector.broadcast %cst_13 : f32 to vector<16x1xf32>
    %30 = arith.addf %26, %29 : vector<16x1xf32>
    %31 = math.rsqrt %30 : vector<16x1xf32>
    %32 = vector.broadcast %31 : vector<16x1xf32> to vector<16x128xf32>
    %33 = arith.mulf %28, %32 : vector<16x128xf32>
    %c0_14 = arith.constant 0 : index
    %c0_15 = arith.constant 0 : index
    %34 = vector.load %arg4[%c0_14, %c0_15] : memref<1x128xf32, #tpu.memory_space<vmem>>, vector<1x128xf32>
    %35 = vector.broadcast %34 : vector<1x128xf32> to vector<16x128xf32>
    %36 = arith.mulf %35, %33 : vector<16x128xf32>
    %c0_16 = arith.constant 0 : index
    %c0_17 = arith.constant 0 : index
    %37 = vector.load %arg5[%c0_16, %c0_17] : memref<1x128xf32, #tpu.memory_space<vmem>>, vector<1x128xf32>
    %38 = vector.broadcast %37 : vector<1x128xf32> to vector<16x128xf32>
    %39 = arith.addf %36, %38 : vector<16x128xf32>
    %40 = arith.truncf %39 : vector<16x128xf32> to vector<16x128xbf16>
    %c0_18 = arith.constant 0 : index
    %c0_19 = arith.constant 0 : index
    %41 = vector.load %arg6[%c0_18, %c0_19] : memref<16x128xbf16, #tpu.memory_space<vmem>>, vector<16x128xbf16>
    tpu.vector_store %arg6[%c0_18, %c0_19], %40 {strides = array<i32>} : memref<16x128xbf16, #tpu.memory_space<vmem>>, vector<16x128xbf16>,
    return
  }
  func.func @transform_0(%arg0: i32) -> (i32, i32) {
    %c0_i32 = arith.constant 0 : i32
    %c0_i32_0 = arith.constant 0 : i32
    return %arg0, %c0_i32 : i32, i32
  }
  func.func @transform_1(%arg0: i32) -> (i32, i32) {
    %c0_i32 = arith.constant 0 : i32
    %c0_i32_0 = arith.constant 0 : i32
    %c0_i32_1 = arith.constant 0 : i32
    return %c0_i32, %c0_i32_0 : i32, i32
  }
  func.func @transform_2(%arg0: i32) -> (i32, i32) {
    %c0_i32 = arith.constant 0 : i32
    %c0_i32_0 = arith.constant 0 : i32
    %c0_i32_1 = arith.constant 0 : i32
    return %c0_i32, %c0_i32_0 : i32, i32
  }
  func.func @transform_3(%arg0: i32) -> (i32, i32) {
    %c0_i32 = arith.constant 0 : i32
    %c0_i32_0 = arith.constant 0 : i32
    %c0_i32_1 = arith.constant 0 : i32
    return %c0_i32, %c0_i32_0 : i32, i32
  }
  func.func @transform_4(%arg0: i32) -> (i32, i32) {
    %c0_i32 = arith.constant 0 : i32
    %c0_i32_0 = arith.constant 0 : i32
    %c0_i32_1 = arith.constant 0 : i32
    return %c0_i32, %c0_i32_0 : i32, i32
  }
  func.func @transform_5(%arg0: i32) -> (i32, i32) {
    %c0_i32 = arith.constant 0 : i32
    %c0_i32_0 = arith.constant 0 : i32
    return %arg0, %c0_i32 : i32, i32
  }
}

</mosaic_0001>

<bundles_post_ra>
// kernel: tpu_custom_call.1
= control target key start
LH: loop header
LB: loop body
LE: loop exit
PB: predicated region body
PF: predicated region fallthrough
CT: control target
= control target key end

     0   :  { %10 = vsyncpa [#allocation3], 0  ;;  %s459_s0 = inlined_call_operand.hbm [shape: bf16[16,128], index: 0, kind: input, shape index: {}]   ;;  %s460_s1 = inlined_call_operand.hbm [shape: bf16[128,128], index: 1, kind: input, shape index: {}]   ;;  %s461_s2 = inlined_call_operand.vmem [shape: f32[1,128], index: 2, kind: input, shape index: {}]   ;;  %s462_s3 = inlined_call_operand.vmem [shape: f32[1,128], index: 3, kind: input, shape index: {}]   ;;  %s463_s4 = inlined_call_operand.vmem [shape: f32[1,128], index: 4, kind: input, shape index: {}]   ;;  %s464_s5 = inlined_call_operand.hbm [shape: bf16[16,128], index: 5, kind: output, shape index: {}]  }
   0x1   :  { %11 = vsyncpa [#allocation6], 0 }
   0x2   :  { %12 = vsyncpa [#allocation4], 0  ;;  %s395_s18 = smov [#allocation2]  }
   0x3   :  { %s18_s19 = sshll.u32 %s395_s18, 4  ;;  %s19_s19 = int_to_ptr.vmem [resolvable:$true] %s18_s19 }
   0x4   :  { %s337_s20 = scalar_lea.vmem %s19_s19, 128  ;;  %p342_p1 = scmp.lt.s32.totalorder %s19_s19, %s19_s19 }
   0x5   :  { %p338_p0 = scmp.ne.s32.totalorder %s19_s19, %s337_s20  ;;  %p343_p2 = scmp.lt.s32.totalorder %s337_s20, %s337_s20 }
   0x7   :  { %p344_p3 = por %p343_p2, %p342_p1 }
   0x9   :  { %p345_p4 = pnand %p344_p3, %p338_p0 }
   0xb   :  { %348 = shalt.err (!%p345_p4)
}
   0xc   :  { %s396_s21 = smov 64   ;;  %s397_s22 = smov 4  }
   0xd   :  { %24 = dma.hbm_to_vmem [thread:$0]  %s459_s0, 128, %s19_s19, [#allocation3], %s396_s21, %s396_s21, %s397_s22  }
   0xe   :  { %s398_s25 = smov [#allocation5]  }
   0xf   :  { %s30_s26 = sshll.u32 %s398_s25, 4  ;;  %s31_s26 = int_to_ptr.vmem [resolvable:$true] %s30_s26 }
  0x10   :  { %s357_s27 = scalar_lea.vmem %s31_s26, 1024  ;;  %p362_p6 = scmp.lt.s32.totalorder %s31_s26, %s31_s26 }
  0x11   :  { %p358_p5 = scmp.ne.s32.totalorder %s31_s26, %s357_s27  ;;  %p363_p7 = scmp.lt.s32.totalorder %s357_s27, %s357_s27 }
  0x13   :  { %p364_p8 = por %p363_p7, %p362_p6 }
  0x15   :  { %p365_p9 = pnand %p364_p8, %p358_p5 }
  0x17   :  { %368 = shalt.err (!%p365_p9)
}
  0x18   :  { %36 = dma.hbm_to_vmem [thread:$0]  %s460_s1, 1024, %s31_s26, [#allocation6], %s396_s21, %s396_s21, %s397_s22  }
  0x19   :  { %389 = dma.done.wait [#allocation3], 128  }
  0x1a   :  { %390 = vsyncadd [#allocation3], 4294967168 }
  0x1b   :  { %391 = dma.done.wait [#allocation6], 1024  }
  0x1c   :  { %392 = vsyncadd [#allocation6], 4294966272  ;;  %v399_v0 = vmov 0.0   ;;  %vm400_vm0 = vmmov 0   ;;  %v312_v1 = vld [vmem:[#allocation5 + $0x38] sm:$0xff]   ;;  %v313_v2 = vld [vmem:[#allocation5 + $0x30] sm:$0xff]  }
  0x1d   :  { %285 = vmatprep.subr.bf16.mxu0 %v399_v0  ;;  %301 = vmatprep.mubr.msk.bf16.mxu0 %vm400_vm0, %v399_v0  ;;  %v314_v3 = vld [vmem:[#allocation5 + $0x28] sm:$0xff]   ;;  %v315_v4 = vld [vmem:[#allocation5 + $0x20] sm:$0xff]   ;;  %v316_v5 = vld [vmem:[#allocation5 + $0x18] sm:$0xff]   ;;  %s401_s8 = smov [#allocation7]  }
  0x1e   :  { %286 = vmatpush3.bf16.xpose.msra.mxu0 %v312_v1  ;;  %v317_v6 = vld [vmem:[#allocation5 + $0x10] sm:$0xff]   ;;  %v318_v7 = vld [vmem:[#allocation5 + $0x8] sm:$0xff]   ;;  %v319_v8 = vld [vmem:[#allocation5] sm:$0xff]   ;;  %s242_s9 = sshll.u32 %s401_s8, 4  ;;  %s243_s9 = int_to_ptr.vmem [resolvable:$true] %s242_s9 }
  0x1f   :  { %287 = vmatprep.subr.bf16.mxu0 %v399_v0  ;;  %v320_v9 = vld [vmem:[#allocation2] sm:$0xff]   ;;  %s369_s10 = scalar_lea.vmem %s243_s9, 128  ;;  %p374_p11 = scmp.lt.s32.totalorder %s243_s9, %s243_s9 }
  0x20   :  { %v255_v10 = vld [vmem:[%s461_s2] ss:$0 sm:$0xff]  ;;  %p370_p10 = scmp.ne.s32.totalorder %s243_s9, %s369_s10  ;;  %p375_p12 = scmp.lt.s32.totalorder %s369_s10, %s369_s10 }
  0x21   :  { %v265_v48 = vld [vmem:[%s462_s3] ss:$0 sm:$0xff] }
  0x22   :  { %v266_v53 = vld [vmem:[%s463_s4] ss:$0 sm:$0xff]  ;;  %p376_p13 = por %p375_p12, %p374_p11 }
  0x24   :  { %p377_p0 = pnand %p376_p13, %p370_p10 }
  0x26   :  { %288 = vmatpush3.bf16.xpose.msra.mxu0 %v313_v2 }
  0x27   :  { %289 = vmatprep.subr.bf16.mxu0 %v399_v0 }
  0x2e   :  { %290 = vmatpush3.bf16.xpose.msra.mxu0 %v314_v3 }
  0x2f   :  { %291 = vmatprep.subr.bf16.mxu0 %v399_v0 }
  0x36   :  { %292 = vmatpush3.bf16.xpose.msra.mxu0 %v315_v4 }
  0x37   :  { %293 = vmatprep.subr.bf16.mxu0 %v399_v0 }
  0x3e   :  { %294 = vmatpush3.bf16.xpose.msra.mxu0 %v316_v5 }
  0x3f   :  { %295 = vmatprep.subr.bf16.mxu0 %v399_v0 }
  0x46   :  { %296 = vmatpush3.bf16.xpose.msra.mxu0 %v317_v6 }
  0x47   :  { %297 = vmatprep.subr.bf16.mxu0 %v399_v0 }
  0x4e   :  { %298 = vmatpush3.bf16.xpose.msra.mxu0 %v318_v7 }
  0x4f   :  { %299 = vmatprep.subr.bf16.mxu0 %v399_v0 }
  0x56   :  { %300 = vmatpush3.bf16.xpose.msra.mxu0 %v319_v8 }
  0x5d   :  { %302 = vmatmul.mubr.bf16.vlgmr.msra.gmra.mxu0 %v320_v9 }
 0x11d   :  { %v163_v11 = vpop.f32.mrf.mxu0 }
 0x11e   :  { %v164_v12 = vadd.f32 %v255_v10, %v163_v11 }
 0x11f   :  { %v303_v13 = vpop.f32.mrf.mxu0 }
 0x120   :  { %v172_v14 = vmul.f32 0.70710677, %v164_v12  ;;  %v170_v20 = vmul.f32 0.5, %v164_v12 }
 0x121   :  { %v166_v15 = vpop.f32.mrf.mxu0 }
 0x122   :  { %321 = verf.f32 %v172_v14  ;;  %v167_v16 = vadd.f32 %v255_v10, %v166_v15 }
 0x123   :  { %v304_v17 = vpop.f32.mrf.mxu0 }
 0x124   :  { %v173_v18 = vmul.f32 0.70710677, %v167_v16  ;;  %v171_v24 = vmul.f32 0.5, %v167_v16 }
 0x126   :  { %323 = verf.f32 %v173_v18 }
 0x12f   :  { %v322_v19 = vpop.eup %321 }
 0x130   :  { %v176_v21 = vadd.f32 1.0, %v322_v19 }
 0x132   :  { %v178_v22 = vmul.f32 %v176_v21, %v170_v20 }
 0x133   :  { %v324_v23 = vpop.eup %323 }
 0x134   :  { %180 = vadd.xlane.f32.xlu0 %v178_v22  ;;  %v187_v25 = vmul.f32 %v178_v22, %v178_v22  ;;  %v177_v26 = vadd.f32 1.0, %v324_v23 }
 0x136   :  { %189 = vadd.xlane.f32.xlu1 %v187_v25  ;;  %v179_v27 = vmul.f32 %v177_v26, %v171_v24 }
 0x138   :  { %182 = vadd.xlane.f32.xlu0 %v179_v27  ;;  %v188_v28 = vmul.f32 %v179_v27, %v179_v27 }
 0x13a   :  { %191 = vadd.xlane.f32.xlu1 %v188_v28 }
 0x1bd   :  { %v181_v29 = vpop.xlane.xlu0 %180 }
 0x1be   :  { %v185_v30 = vmul.f32 0.0078125, %v181_v29 }
 0x1bf   :  { %v190_v31 = vpop.xlane.xlu1 %189 }
 0x1c0   :  { %v195_v32 = vmul.f32 %v185_v30, %v185_v30  ;;  %v193_v33 = vmul.f32 0.0078125, %v190_v31  ;;  %v201_v45 = vsub.f32 %v178_v22, %v185_v30 }
 0x1c1   :  { %v183_v34 = vpop.xlane.xlu0 %182 }
 0x1c2   :  { %v197_v35 = vsub.f32 %v193_v33, %v195_v32  ;;  %v186_v36 = vmul.f32 0.0078125, %v183_v34 }
 0x1c3   :  { %v192_v37 = vpop.xlane.xlu1 %191 }
 0x1c4   :  { %v199_v38 = vmax.f32 %v197_v35, 0.0  ;;  %v196_v39 = vmul.f32 %v186_v36, %v186_v36  ;;  %v194_v40 = vmul.f32 0.0078125, %v192_v37  ;;  %v202_v49 = vsub.f32 %v179_v27, %v186_v36 }
 0x1c6   :  { %v203_v41 = vadd.f32 1e-12, %v199_v38  ;;  %v198_v42 = vsub.f32 %v194_v40, %v196_v39 }
 0x1c8   :  { %325 = vrsqrt.f32 %v203_v41  ;;  %v200_v43 = vmax.f32 %v198_v42, 0.0 }
 0x1ca   :  { %v204_v44 = vadd.f32 1e-12, %v200_v43 }
 0x1cc   :  { %327 = vrsqrt.f32 %v204_v44 }
 0x1d5   :  { %v326_v46 = vpop.eup %325 }
 0x1d6   :  { %v207_v47 = vmul.f32 %v326_v46, %v201_v45 }
 0x1d8   :  { %v216_v52 = vmul.f32 %v265_v48, %v207_v47 }
 0x1d9   :  { %v328_v50 = vpop.eup %327 }
 0x1da   :  { %v208_v51 = vmul.f32 %v328_v50, %v202_v49  ;;  %v225_v55 = vadd.f32 %v266_v53, %v216_v52 }
 0x1dc   :  { %v217_v54 = vmul.f32 %v265_v48, %v208_v51 }
 0x1de   :  { %v226_v56 = vadd.f32 %v266_v53, %v217_v54 }
 0x1e0   :  { %v274_v57 = vpack.c.bf16 %v226_v56, %v225_v55 }
 0x1e2   :  { %275 = vst [vmem:[#allocation7] sm:$0xff] %v274_v57  }
 0x1e3   :  { %380 = shalt.err (!%p377_p0)
}
 0x1e4   :  { %248 = dma.vmem_to_hbm [thread:$0]  %s243_s9, 128, %s464_s5, [#allocation4], %s396_s21, %s396_s21, %s397_s22  }
 0x1e5   :  { %393 = dma.done.wait [#allocation4], 128  }
 0x1e6   :  { %394 = vsyncadd [#allocation4], 4294967168 }
 0x1e7   :  { %252 = vsyncpa [#allocation3], 1 }
 0x1e8   :  { %253 = vsyncpa [#allocation6], 1 }
 0x1e9   :  { %254 = vsyncpa [#allocation4], 1 }

</bundles_post_ra>
